<compile_context>
chip_gen: v6e
topology: v6e:2x2x1
jax: 0.10.0
libtpu: 0.0.40
codegen_flags: <defaults>
</compile_context>

<pallas_src>
import jax
import jax.numpy as jnp
import numpy as np
from jax.experimental import pallas as pl
from jax.experimental.pallas import tpu as pltpu


def _make_simcse_kernel(temperature: float, b: int, tk: int):
    inv_temp = 1.0 / float(temperature)
    inv_b = 1.0 / float(b)
    neg_pairs = b * (b - 1)
    # guard b == 1 (negative-similarity denominator would be zero)
    inv_neg = 1.0 / float(neg_pairs) if neg_pairs > 0 else 0.0

    def kernel(e1_ref, e2_ref, stats_ref, acc_sim, acc_n1, acc_n2):
        k = pl.program_id(0)

        @pl.when(k == 0)
        def _init():
            acc_sim[...] = jnp.zeros_like(acc_sim)
            acc_n1[...] = jnp.zeros_like(acc_n1)
            acc_n2[...] = jnp.zeros_like(acc_n2)

        e1 = e1_ref[...]                      # (b, tk) in input dtype
        e2 = e2_ref[...]                      # (b, tk) in input dtype

        # Raw Gram accumulation on the MXU, contracting on H of both operands
        # (no .T, no normalized copies); f32 accumulation.
        acc_sim[...] += jax.lax.dot_general(
            e1, e2, (((1,), (1,)), ((), ())),
            preferred_element_type=jnp.float32)

        # Squared-norm partial sums (f32 for accuracy; v5e VPU has no bf16).
        e1f = e1.astype(jnp.float32)
        e2f = e2.astype(jnp.float32)
        # row norms of e1 -> natural (b, 1) column layout (XLU lane reduce,
        # free slot while the MXU runs the main matmul).
        acc_n1[...] += jnp.sum(e1f * e1f, axis=1, keepdims=True)
        # row norms of e2 -> produced directly in (1, b) row layout via a
        # tiny ones-row matmul (avoids any (b,1)->(1,b) relayout at finalize).
        ones_row = jnp.ones((1, tk), jnp.float32)
        acc_n2[...] += jax.lax.dot_general(
            ones_row, e2f * e2f, (((1,), (1,)), ((), ())),
            preferred_element_type=jnp.float32)

        @pl.when(k == pl.num_programs(0) - 1)
        def _finalize():
            # torch F.normalize(p=2): x / max(||x||, 1e-12)  ->  rsqrt on EUP.
            # Fold 1/temperature into the (b,1) row scale (cheap) so the (b,b)
            # epilogue does only two elementwise multiplies.
            inv_n1 = jax.lax.rsqrt(jnp.maximum(acc_n1[...], 1e-24)) * inv_temp
            inv_n2 = jax.lax.rsqrt(jnp.maximum(acc_n2[...], 1e-24))   # (1, b)
            # rank-1 post-matmul scaling == cosine similarity / temperature
            sim = acc_sim[...] * inv_n1 * inv_n2                       # (b, b)

            row = jax.lax.broadcasted_iota(jnp.int32, (b, b), 0)
            col = jax.lax.broadcasted_iota(jnp.int32, (b, b), 1)
            diag_mask = row == col
            diag = jnp.sum(jnp.where(diag_mask, sim, 0.0),
                           axis=1, keepdims=True)                      # (b, 1)

            # cross_entropy(sim, arange(b)) = mean_i(logsumexp(sim[i]) - sim[i,i])
            m = jnp.max(sim, axis=1, keepdims=True)
            lse = m + jnp.log(jnp.sum(jnp.exp(sim - m), axis=1, keepdims=True))
            ce = lse - diag                                            # (b, 1)

            loss = jnp.sum(ce, axis=0, keepdims=True) * inv_b          # (1, 1)
            diag_sum = jnp.sum(diag, axis=0, keepdims=True)            # (1, 1)
            pos = diag_sum * inv_b                                     # (1, 1)
            row_sum = jnp.sum(sim, axis=1, keepdims=True)              # (b, 1)
            total = jnp.sum(row_sum, axis=0, keepdims=True)            # (1, 1)
            neg = (total - diag_sum) * inv_neg                         # (1, 1)

            # Pack the three scalars into one lane-dense (1, 128) row:
            # lane 0 = simcse_loss, lane 1 = positive_sim, lane 2 = negative_sim
            lane = jax.lax.broadcasted_iota(jnp.int32, (1, 128), 1)
            packed = jnp.where(lane == 0, loss,
                      jnp.where(lane == 1, pos,
                       jnp.where(lane == 2, neg, 0.0)))
            stats_ref[...] = packed

    return kernel


def _pick_h_tile(b: int, h: int, itemsize: int,
                 budget_bytes: int = 16 << 20) -> int:
    """Largest H tile (multiple of 128 dividing H, or full H) whose
    double-buffered input footprint (2 inputs x 2 buffers) fits the budget."""
    def fits(tk):
        return 4 * b * tk * itemsize <= budget_bytes
    if h <= 128 or fits(h):
        return h
    for tk in (4096, 2048, 1024, 512, 256, 128):
        if tk <= h and h % tk == 0 and fits(tk):
            return tk
    return h  # fallback: single full-H block


def simcse_embedding_loss(embeddings1, embeddings2,
                          temperature: float = 0.05,
                          embedding_weight: float = 1.0,
                          simcse_weight: float = 0.1,
                          h_tile: int | None = None):
    """Pallas implementation of SimCSEEmbeddingLoss.forward.

    embeddings1 / embeddings2: (B, H) 'pooler_output' tensors from the two
    dropout-perturbed forward passes.
    """
    b, h = embeddings1.shape
    assert embeddings2.shape == (b, h)

    itemsize = jnp.dtype(embeddings1.dtype).itemsize
    tk = _pick_h_tile(b, h, itemsize) if h_tile is None else int(h_tile)
    assert h % tk == 0, "H tile must divide H"
    assert tk == h or tk % 128 == 0, "H tile must be a multiple of 128 or full H"
    grid = (h // tk,)

    kernel = _make_simcse_kernel(temperature, b, tk)

    # Double-buffered input tiles + f32 accumulators + slack.
    vmem_need = 4 * b * tk * itemsize + b * b * 4 + 4 * 128 * 4 + (2 << 20)
    vmem_limit = int(min(max(vmem_need, 16 << 20), 100 << 20))

    cost = pl.CostEstimate(
        flops=2 * b * b * h + 2 * b * h + 4 * b * h,
        transcendentals=b * b + 2 * b,
        bytes_accessed=2 * b * h * itemsize + 128 * 4,
    )

    stats = pl.pallas_call(
        kernel,
        out_shape=jax.ShapeDtypeStruct((1, 128), jnp.float32),
        grid_spec=pltpu.PrefetchScalarGridSpec(
            num_scalar_prefetch=0,
            grid=grid,
            in_specs=[
                pl.BlockSpec((b, tk), lambda k: (0, k)),
                pl.BlockSpec((b, tk), lambda k: (0, k)),
            ],
            out_specs=pl.BlockSpec((1, 128), lambda k: (0, 0)),
            scratch_shapes=[
                pltpu.VMEM((b, b), jnp.float32),   # raw Gram accumulator
                pltpu.VMEM((b, 1), jnp.float32),   # ||e1||^2 partial sums
                pltpu.VMEM((1, b), jnp.float32),   # ||e2||^2 partial sums (row)
            ],
        ),
        compiler_params=pltpu.CompilerParams(
            dimension_semantics=("arbitrary",),
            vmem_limit_bytes=vmem_limit,
        ),
        cost_estimate=cost,
    )(embeddings1, embeddings2)

    simcse_loss = stats[0, 0]
    pos_sim = stats[0, 1]
    neg_sim = stats[0, 2]

    # TODO(synk): external metrics_manager.compute_embedding_metrics not
    # reproducible -> embedding_loss / accuracy / perplexity set to 0.
    embedding_loss = jnp.float32(0.0)
    accuracy = jnp.float32(0.0)
    perplexity = jnp.float32(0.0)

    total_loss = embedding_weight * embedding_loss + simcse_weight * simcse_loss

    return {
        "loss": total_loss,
        "embedding_loss": embedding_loss,
        "simcse_loss": simcse_loss,
        "accuracy": accuracy,
        "perplexity": perplexity,
        "positive_similarity": pos_sim,
        "negative_similarity": neg_sim,
    }


if __name__ == "__main__":
    B, H = 8, 256  # small batch of pooler outputs
    key = jax.random.PRNGKey(0)
    k1, k2 = jax.random.split(key)
    base = jax.random.normal(k1, (B, H), dtype=jnp.float32)
    noise = 0.1 * jax.random.normal(k2, (B, H), dtype=jnp.float32)
    embeddings1 = base
    embeddings2 = base + noise

    # Default path (single H block) and forced multi-step H reduction path.
    out = simcse_embedding_loss(embeddings1, embeddings2)
    out_tiled = simcse_embedding_loss(embeddings1, embeddings2, h_tile=128)
    jax.block_until_ready(out["loss"])
    jax.block_until_ready(out_tiled["loss"])

    # Reference in float64 numpy (kernel feeds raw values to the MXU, so allow
    # a loose tolerance covering bf16-pass matmul rounding on TPU).
    e1 = np.asarray(embeddings1, dtype=np.float64)
    e2 = np.asarray(embeddings2, dtype=np.float64)
    e1n = e1 / np.maximum(np.linalg.norm(e1, axis=1, keepdims=True), 1e-12)
    e2n = e2 / np.maximum(np.linalg.norm(e2, axis=1, keepdims=True), 1e-12)
    sim_ref = (e1n @ e2n.T) / 0.05
    m = sim_ref.max(axis=1, keepdims=True)
    lse = m[:, 0] + np.log(np.exp(sim_ref - m).sum(axis=1))
    ce_ref = float(np.mean(lse - np.diag(sim_ref)))
    pos_ref = float(np.mean(np.diag(sim_ref)))
    neg_ref = float((sim_ref.sum() - np.trace(sim_ref)) / (B * (B - 1)))

    for o in (out, out_tiled):
        assert np.allclose(float(o["simcse_loss"]), ce_ref, atol=5e-2, rtol=5e-2)
        assert np.allclose(float(o["positive_similarity"]), pos_ref,
                           atol=5e-2, rtol=5e-2)
        assert np.allclose(float(o["negative_similarity"]), neg_ref,
                           atol=5e-2, rtol=5e-2)

    print("KERNEL_OK")
</pallas_src>

<mosaic_0001>
module attributes {stable_mosaic.version = 11 : i64} {
  func.func @kernel(%arg0: i32, %arg1: memref<8x256xf32, #tpu.memory_space<vmem>>, %arg2: memref<8x256xf32, #tpu.memory_space<vmem>>, %arg3: memref<1x128xf32, #tpu.memory_space<vmem>>, %arg4: memref<8x8xf32, #tpu.memory_space<vmem>>, %arg5: memref<8x1xf32, #tpu.memory_space<vmem>>, %arg6: memref<1x8xf32, #tpu.memory_space<vmem>>) attributes {dimension_semantics = [#tpu.dimension_semantics<arbitrary>], iteration_bounds = array<i64: 1>, scalar_prefetch = 0 : i64, scratch_operands = 3 : i64, tpu.core_type = #tpu.core_type<tc>, window_params = [{transform_indices = @transform_0, window_bounds = array<i64: 8, 256>}, {transform_indices = @transform_1, window_bounds = array<i64: 8, 256>}, {pipeline_mode = #tpu.pipeline_mode<synchronous>, transform_indices = @transform_2, window_bounds = array<i64: 1, 128>}]} {
    %c0_i32 = arith.constant 0 : i32
    %0 = arith.cmpi eq, %arg0, %c0_i32 : i32
    %1 = arith.extui %0 : i1 to i32
    %c0_i32_0 = arith.constant 0 : i32
    %2 = arith.cmpi ne, %1, %c0_i32_0 : i32
    scf.if %2 {
      %cst_21 = arith.constant 0.000000e+00 : f32
      %24 = vector.broadcast %cst_21 : f32 to vector<8x8xf32>
      %c0_22 = arith.constant 0 : index
      %c0_23 = arith.constant 0 : index
      %25 = vector.load %arg4[%c0_22, %c0_23] : memref<8x8xf32, #tpu.memory_space<vmem>>, vector<8x8xf32>
      tpu.vector_store %arg4[%c0_22, %c0_23], %24 {strides = array<i32>} : memref<8x8xf32, #tpu.memory_space<vmem>>, vector<8x8xf32>,
      %cst_24 = arith.constant 0.000000e+00 : f32
      %26 = vector.broadcast %cst_24 : f32 to vector<8x1xf32>
      %c0_25 = arith.constant 0 : index
      %c0_26 = arith.constant 0 : index
      %27 = vector.load %arg5[%c0_25, %c0_26] : memref<8x1xf32, #tpu.memory_space<vmem>>, vector<8x1xf32>
      tpu.vector_store %arg5[%c0_25, %c0_26], %26 {strides = array<i32>} : memref<8x1xf32, #tpu.memory_space<vmem>>, vector<8x1xf32>,
      %cst_27 = arith.constant 0.000000e+00 : f32
      %28 = vector.broadcast %cst_27 : f32 to vector<1x8xf32>
      %c0_28 = arith.constant 0 : index
      %c0_29 = arith.constant 0 : index
      %29 = vector.load %arg6[%c0_28, %c0_29] : memref<1x8xf32, #tpu.memory_space<vmem>>, vector<1x8xf32>
      tpu.vector_store %arg6[%c0_28, %c0_29], %28 {strides = array<i32>} : memref<1x8xf32, #tpu.memory_space<vmem>>, vector<1x8xf32>,
    } else {
    }
    %c0 = arith.constant 0 : index
    %c0_1 = arith.constant 0 : index
    %3 = vector.load %arg1[%c0, %c0_1] : memref<8x256xf32, #tpu.memory_space<vmem>>, vector<8x256xf32>
    %c0_2 = arith.constant 0 : index
    %c0_3 = arith.constant 0 : index
    %4 = vector.load %arg2[%c0_2, %c0_3] : memref<8x256xf32, #tpu.memory_space<vmem>>, vector<8x256xf32>
    %c0_4 = arith.constant 0 : index
    %c0_5 = arith.constant 0 : index
    %5 = vector.load %arg4[%c0_4, %c0_5] : memref<8x8xf32, #tpu.memory_space<vmem>>, vector<8x8xf32>
    %cst = arith.constant dense<0.000000e+00> : vector<8x8xf32>
    %6 = tpu.matmul %3, %4, %cst {dimension_numbers = #tpu.dot_dimension_numbers<[1], [1], [0], [0], [0, 0, 1, 0], [], []>} : vector<8x256xf32>, vector<8x256xf32>, vector<8x8xf32> -> vector<8x8xf32>
    %7 = arith.addf %5, %6 : vector<8x8xf32>
    %c0_6 = arith.constant 0 : index
    %c0_7 = arith.constant 0 : index
    %8 = vector.load %arg4[%c0_6, %c0_7] : memref<8x8xf32, #tpu.memory_space<vmem>>, vector<8x8xf32>
    tpu.vector_store %arg4[%c0_6, %c0_7], %7 {strides = array<i32>} : memref<8x8xf32, #tpu.memory_space<vmem>>, vector<8x8xf32>,
    %c0_8 = arith.constant 0 : index
    %c0_9 = arith.constant 0 : index
    %9 = vector.load %arg5[%c0_8, %c0_9] : memref<8x1xf32, #tpu.memory_space<vmem>>, vector<8x1xf32>
    %10 = arith.mulf %3, %3 : vector<8x256xf32>
    %cst_10 = arith.constant dense<0.000000e+00> : vector<8xf32>
    %11 = vector.multi_reduction <add>, %10, %cst_10 [1] : vector<8x256xf32> to vector<8xf32>
    %12 = vector.shape_cast %11 : vector<8xf32> to vector<8x1xf32>
    %13 = arith.addf %9, %12 : vector<8x1xf32>
    %c0_11 = arith.constant 0 : index
    %c0_12 = arith.constant 0 : index
    %14 = vector.load %arg5[%c0_11, %c0_12] : memref<8x1xf32, #tpu.memory_space<vmem>>, vector<8x1xf32>
    tpu.vector_store %arg5[%c0_11, %c0_12], %13 {strides = array<i32>} : memref<8x1xf32, #tpu.memory_space<vmem>>, vector<8x1xf32>,
    %cst_13 = arith.constant 1.000000e+00 : f32
    %15 = vector.broadcast %cst_13 : f32 to vector<1x256xf32>
    %c0_14 = arith.constant 0 : index
    %c0_15 = arith.constant 0 : index
    %16 = vector.load %arg6[%c0_14, %c0_15] : memref<1x8xf32, #tpu.memory_space<vmem>>, vector<1x8xf32>
    %17 = arith.mulf %4, %4 : vector<8x256xf32>
    %cst_16 = arith.constant dense<0.000000e+00> : vector<1x8xf32>
    %18 = tpu.matmul %15, %17, %cst_16 {dimension_numbers = #tpu.dot_dimension_numbers<[1], [1], [0], [0], [0, 0, 1, 0], [], []>} : vector<1x256xf32>, vector<8x256xf32>, vector<1x8xf32> -> vector<1x8xf32>
    %19 = arith.addf %16, %18 : vector<1x8xf32>
    %c0_17 = arith.constant 0 : index
    %c0_18 = arith.constant 0 : index
    %20 = vector.load %arg6[%c0_17, %c0_18] : memref<1x8xf32, #tpu.memory_space<vmem>>, vector<1x8xf32>
    tpu.vector_store %arg6[%c0_17, %c0_18], %19 {strides = array<i32>} : memref<1x8xf32, #tpu.memory_space<vmem>>, vector<1x8xf32>,
    %c0_i32_19 = arith.constant 0 : i32
    %21 = arith.cmpi eq, %arg0, %c0_i32_19 : i32
    %22 = arith.extui %21 : i1 to i32
    %c0_i32_20 = arith.constant 0 : i32
    %23 = arith.cmpi ne, %22, %c0_i32_20 : i32
    scf.if %23 {
      %c0_21 = arith.constant 0 : index
      %c0_22 = arith.constant 0 : index
      %24 = vector.load %arg5[%c0_21, %c0_22] : memref<8x1xf32, #tpu.memory_space<vmem>>, vector<8x1xf32>
      %cst_23 = arith.constant 1.000000e-24 : f32
      %25 = vector.broadcast %cst_23 : f32 to vector<8x1xf32>
      %26 = arith.maximumf %24, %25 : vector<8x1xf32>
      %27 = math.rsqrt %26 : vector<8x1xf32>
      %cst_24 = arith.constant 2.000000e+01 : f32
      %28 = vector.broadcast %cst_24 : f32 to vector<8x1xf32>
      %29 = arith.mulf %27, %28 : vector<8x1xf32>
      %c0_25 = arith.constant 0 : index
      %c0_26 = arith.constant 0 : index
      %30 = vector.load %arg6[%c0_25, %c0_26] : memref<1x8xf32, #tpu.memory_space<vmem>>, vector<1x8xf32>
      %cst_27 = arith.constant 1.000000e-24 : f32
      %31 = vector.broadcast %cst_27 : f32 to vector<1x8xf32>
      %32 = arith.maximumf %30, %31 : vector<1x8xf32>
      %33 = math.rsqrt %32 : vector<1x8xf32>
      %c0_28 = arith.constant 0 : index
      %c0_29 = arith.constant 0 : index
      %34 = vector.load %arg4[%c0_28, %c0_29] : memref<8x8xf32, #tpu.memory_space<vmem>>, vector<8x8xf32>
      %35 = vector.broadcast %29 : vector<8x1xf32> to vector<8x8xf32>
      %36 = arith.mulf %34, %35 : vector<8x8xf32>
      %37 = vector.broadcast %33 : vector<1x8xf32> to vector<8x8xf32>
      %38 = arith.mulf %36, %37 : vector<8x8xf32>
      %39 = tpu.iota {dimensions = array<i32: 0>} : vector<8x8xi32>
      %40 = tpu.iota {dimensions = array<i32: 1>} : vector<8x8xi32>
      %41 = arith.cmpi eq, %39, %40 : vector<8x8xi32>
      %cst_30 = arith.constant 0.000000e+00 : f32
      %42 = vector.broadcast %cst_30 : f32 to vector<8x8xf32>
      %43 = arith.select %41, %38, %42 : vector<8x8xi1>, vector<8x8xf32>
      %cst_31 = arith.constant dense<0.000000e+00> : vector<8xf32>
      %44 = vector.multi_reduction <add>, %43, %cst_31 [1] : vector<8x8xf32> to vector<8xf32>
      %45 = vector.shape_cast %44 : vector<8xf32> to vector<8x1xf32>
      %cst_32 = arith.constant dense<0xFF800000> : vector<8xf32>
      %46 = vector.multi_reduction <maximumf>, %38, %cst_32 [1] : vector<8x8xf32> to vector<8xf32>
      %47 = vector.shape_cast %46 : vector<8xf32> to vector<8x1xf32>
      %48 = vector.broadcast %47 : vector<8x1xf32> to vector<8x8xf32>
      %49 = arith.subf %38, %48 : vector<8x8xf32>
      %50 = math.exp %49 : vector<8x8xf32>
      %cst_33 = arith.constant dense<0.000000e+00> : vector<8xf32>
      %51 = vector.multi_reduction <add>, %50, %cst_33 [1] : vector<8x8xf32> to vector<8xf32>
      %52 = vector.shape_cast %51 : vector<8xf32> to vector<8x1xf32>
      %53 = math.log %52 : vector<8x1xf32>
      %54 = arith.addf %47, %53 : vector<8x1xf32>
      %55 = arith.subf %54, %45 : vector<8x1xf32>
      %cst_34 = arith.constant dense<0.000000e+00> : vector<1xf32>
      %56 = vector.multi_reduction <add>, %55, %cst_34 [0] : vector<8x1xf32> to vector<1xf32>
      %57 = vector.shape_cast %56 : vector<1xf32> to vector<1x1xf32>
      %cst_35 = arith.constant 1.250000e-01 : f32
      %58 = vector.broadcast %cst_35 : f32 to vector<1x1xf32>
      %59 = arith.mulf %57, %58 : vector<1x1xf32>
      %cst_36 = arith.constant dense<0.000000e+00> : vector<1xf32>
      %60 = vector.multi_reduction <add>, %45, %cst_36 [0] : vector<8x1xf32> to vector<1xf32>
      %61 = vector.shape_cast %60 : vector<1xf32> to vector<1x1xf32>
      %cst_37 = arith.constant 1.250000e-01 : f32
      %62 = vector.broadcast %cst_37 : f32 to vector<1x1xf32>
      %63 = arith.mulf %61, %62 : vector<1x1xf32>
      %cst_38 = arith.constant dense<0.000000e+00> : vector<8xf32>
      %64 = vector.multi_reduction <add>, %38, %cst_38 [1] : vector<8x8xf32> to vector<8xf32>
      %65 = vector.shape_cast %64 : vector<8xf32> to vector<8x1xf32>
      %cst_39 = arith.constant dense<0.000000e+00> : vector<1xf32>
      %66 = vector.multi_reduction <add>, %65, %cst_39 [0] : vector<8x1xf32> to vector<1xf32>
      %67 = vector.shape_cast %66 : vector<1xf32> to vector<1x1xf32>
      %68 = arith.subf %67, %61 : vector<1x1xf32>
      %cst_40 = arith.constant 0.0178571437 : f32
      %69 = vector.broadcast %cst_40 : f32 to vector<1x1xf32>
      %70 = arith.mulf %68, %69 : vector<1x1xf32>
      %71 = tpu.iota {dimensions = array<i32: 1>} : vector<1x128xi32>
      %c0_i32_41 = arith.constant 0 : i32
      %72 = vector.broadcast %c0_i32_41 : i32 to vector<1x128xi32>
      %73 = arith.cmpi eq, %71, %72 : vector<1x128xi32>
      %c1_i32 = arith.constant 1 : i32
      %74 = vector.broadcast %c1_i32 : i32 to vector<1x128xi32>
      %75 = arith.cmpi eq, %71, %74 : vector<1x128xi32>
      %c2_i32 = arith.constant 2 : i32
      %76 = vector.broadcast %c2_i32 : i32 to vector<1x128xi32>
      %77 = arith.cmpi eq, %71, %76 : vector<1x128xi32>
      %cst_42 = arith.constant 0.000000e+00 : f32
      %78 = vector.shape_cast %70 : vector<1x1xf32> to vector<1x1xf32>
      %79 = vector.broadcast %78 : vector<1x1xf32> to vector<1x128xf32>
      %80 = vector.broadcast %cst_42 : f32 to vector<1x128xf32>
      %81 = arith.select %77, %79, %80 : vector<1x128xi1>, vector<1x128xf32>
      %82 = vector.shape_cast %63 : vector<1x1xf32> to vector<1x1xf32>
      %83 = vector.broadcast %82 : vector<1x1xf32> to vector<1x128xf32>
      %84 = arith.select %75, %83, %81 : vector<1x128xi1>, vector<1x128xf32>
      %85 = vector.shape_cast %59 : vector<1x1xf32> to vector<1x1xf32>
      %86 = vector.broadcast %85 : vector<1x1xf32> to vector<1x128xf32>
      %87 = arith.select %73, %86, %84 : vector<1x128xi1>, vector<1x128xf32>
      %c0_43 = arith.constant 0 : index
      %c0_44 = arith.constant 0 : index
      %88 = vector.load %arg3[%c0_43, %c0_44] : memref<1x128xf32, #tpu.memory_space<vmem>>, vector<1x128xf32>
      tpu.vector_store %arg3[%c0_43, %c0_44], %87 {strides = array<i32>} : memref<1x128xf32, #tpu.memory_space<vmem>>, vector<1x128xf32>,
    } else {
    }
    return
  }
  func.func @transform_0(%arg0: i32) -> (i32, i32) {
    %c0_i32 = arith.constant 0 : i32
    %c0_i32_0 = arith.constant 0 : i32
    return %c0_i32, %arg0 : i32, i32
  }
  func.func @transform_1(%arg0: i32) -> (i32, i32) {
    %c0_i32 = arith.constant 0 : i32
    %c0_i32_0 = arith.constant 0 : i32
    return %c0_i32, %arg0 : i32, i32
  }
  func.func @transform_2(%arg0: i32) -> (i32, i32) {
    %c0_i32 = arith.constant 0 : i32
    %c0_i32_0 = arith.constant 0 : i32
    %c0_i32_1 = arith.constant 0 : i32
    return %c0_i32, %c0_i32_0 : i32, i32
  }
}

</mosaic_0001>

<bundles_post_ra>
// kernel: tpu_custom_call.1
= control target key start
LH: loop header
LB: loop body
LE: loop exit
PB: predicated region body
PF: predicated region fallthrough
CT: control target
= control target key end

     0   :  { %7 = vsyncpa [#allocation6], 0  ;;  %s424_s0 = inlined_call_operand.hbm [shape: f32[8,256], index: 0, kind: input, shape index: {}]   ;;  %s425_s1 = inlined_call_operand.hbm [shape: f32[8,256], index: 1, kind: input, shape index: {}]   ;;  %s426_s2 = inlined_call_operand.hbm [shape: f32[1,128], index: 2, kind: output, shape index: {}]  }
   0x1   :  { %8 = vsyncpa [#allocation9], 0 }
   0x2   :  { %9 = vsyncpa [#allocation7], 0  ;;  %s384_s9 = smov [#allocation5]   ;;  %s385_s11 = smov [#allocation8]  }
   0x3   :  { %s16_s10 = sshll.u32 %s384_s9, 4  ;;  %s26_s12 = sshll.u32 %s385_s11, 4  ;;  %s17_s10 = int_to_ptr.vmem [resolvable:$true] %s16_s10  ;;  %s27_s12 = int_to_ptr.vmem [resolvable:$true] %s26_s12 }
   0x4   :  { %s326_s13 = scalar_lea.vmem %s17_s10, 256  ;;  %p331_p1 = scmp.lt.s32.totalorder %s17_s10, %s17_s10 }
   0x5   :  { %p327_p0 = scmp.ne.s32.totalorder %s17_s10, %s326_s13  ;;  %p332_p2 = scmp.lt.s32.totalorder %s326_s13, %s326_s13 }
   0x7   :  { %p333_p3 = por %p332_p2, %p331_p1 }
   0x9   :  { %p334_p4 = pnand %p333_p3, %p327_p0 }
   0xb   :  { %337 = shalt.err (!%p334_p4)
}
   0xc   :  { %19 = dma.hbm_to_vmem [thread:$0]  %s424_s0, 256, %s17_s10, [#allocation6]  }
   0xd   :  { %s346_s16 = scalar_lea.vmem %s27_s12, 256  ;;  %p351_p6 = scmp.lt.s32.totalorder %s27_s12, %s27_s12 }
   0xe   :  { %p347_p5 = scmp.ne.s32.totalorder %s27_s12, %s346_s16  ;;  %p352_p7 = scmp.lt.s32.totalorder %s346_s16, %s346_s16 }
  0x10   :  { %p353_p8 = por %p352_p7, %p351_p6 }
  0x12   :  { %p354_p9 = pnand %p353_p8, %p347_p5 }
  0x14   :  { %357 = shalt.err (!%p354_p9)
}
  0x15   :  { %29 = dma.hbm_to_vmem [thread:$0]  %s425_s1, 256, %s27_s12, [#allocation9]  }
  0x16   :  { %378 = dma.done.wait [#allocation6], 256  }
  0x17   :  { %379 = vsyncadd [#allocation6], 4294967040 }
  0x18   :  { %380 = dma.done.wait [#allocation9], 256  }
  0x19   :  { %381 = vsyncadd [#allocation9], 4294967040  ;;  %vm42_vm0 = vcmask 7168   ;;  %v386_v0 = vmov 1.0   ;;  %v387_v1 = vmov 0.0   ;;  %v46_v2 = vld [vmem:[#allocation5] sm:$0xff]  ;;  %v227_v29 = vlaneseq }
  0x1a   :  { %200 = vmatprep.mubr.f32.mxu1 %v386_v0  ;;  %43 = vst.msk [vmem:[#allocation3] sm:$0xff] %vm42_vm0, %v387_v1  ;;  %v47_v3 = vld [vmem:[#allocation5 + $0x8] sm:$0xff]  ;;  %v49_v4 = vld [vmem:[#allocation8 + $0x8] sm:$0xff]  ;;  %v125_v5 = vmul.f32 %v46_v2, %v46_v2  ;;  %v48_v8 = vld [vmem:[#allocation8] sm:$0xff]  ;;  %v388_v11 = vmov 0   ;;  %vm44_vm1 = vcmask 57344  }
  0x1b   :  { %v126_v6 = vmul.f32 %v47_v3, %v47_v3  ;;  %v135_v7 = vmul.f32 %v49_v4, %v49_v4  ;;  %81 = vmatprep.subr.mxu0 %v49_v4  ;;  %115 = vmatprep.mubr.f32.mxu0 %v47_v3  ;;  %v134_v9 = vmul.f32 %v48_v8, %v48_v8  ;;  %vm40_vm2 = vcmask 64512   ;;  %s389_s0 = smov [#allocation10]  }
  0x1c   :  { %82 = vmatpush1.xpose.msra.mxu0 %v48_v8  ;;  %309 = vset.pattern.permute.xlu0 %v388_v11  ;;  %45 = vst.msk [vmem:[#allocation4] sm:$0x1] %vm44_vm1, %v387_v1  ;;  %v228_v30 = vshrl.u32 %v227_v29, 7  ;;  %v236_v42 = vand.u32 127, %v227_v29  ;;  %s293_s1 = sshll.u32 %s389_s0, 4  ;;  %s294_s1 = int_to_ptr.vmem [resolvable:$true] %s293_s1 }
  0x1d   :  { %v127_v10 = vadd.f32 %v126_v6, %v125_v5  ;;  %166 = vmatprep.subr.mxu1 %v135_v7  ;;  %41 = vst.msk [vmem:[#allocation2] sm:$0xff] %vm40_vm2, %v387_v1  ;;  %s358_s19 = scalar_lea.vmem %s294_s1, 16  ;;  %s362_s20 = scalar_lea.vmem %s294_s1, 32 }
  0x1e   :  { %167 = vmatpush1.xpose.msra.mxu1 %v134_v9  ;;  %v229_v31 = vsub.s32 0, %v228_v30  ;;  %vm237_vm3 = vcmp.eq.s32.totalorder %v228_v30, %v236_v42  ;;  %vm282_vm4 = vcmp.eq.s32.totalorder %v236_v42, 2  ;;  %vm281_vm5 = vcmp.eq.s32.totalorder %v236_v42, 1  ;;  %p359_p10 = scmp.ne.s32.totalorder %s294_s1, %s358_s19  ;;  %p363_p11 = scmp.lt.s32.totalorder %s294_s1, %s294_s1 }
  0x1f   :  { %128 = vadd.xlane.f32.xlu0 %v127_v10  ;;  %116 = vmatmul.mubr.f32.vlgmr.msra.gmra.mxu0 %v46_v2  ;;  %vm280_vm6 = vcmp.eq.s32.totalorder %v236_v42, 0  ;;  %p364_p12 = scmp.lt.s32.totalorder %s362_s20, %s358_s19 }
  0x21   :  { %201 = vmatmul.mubr.f32.vlgmr.msra.gmra.mxu1 %v386_v0  ;;  %v124_v12 = vld [vmem:[#allocation3] sm:$0xff]  ;;  %p365_p13 = por %p364_p12, %p363_p11 }
  0x23   :  { %v133_v20 = vld [vmem:[#allocation4] sm:$0x1]  ;;  %p366_p0 = pnand %p365_p13, %p359_p10 }
  0x24   :  { %v50_v19 = vld [vmem:[#allocation2] sm:$0xff] }
  0xa8   :  { %v129_v13 = vpop.xlane.xlu0 %128 }
  0xa9   :  { %v130_v14 = vadd.f32 %v129_v13, %v124_v12 }
  0xab   :  { %132 = vst.msk [vmem:[#allocation3] sm:$0xff] %vm42_vm0, %v130_v14 }
  0xb2   :  { %v212_v15 = vld [vmem:[#allocation3] sm:$0xff] }
  0xb3   :  { %v213_v16 = vmax.f32 %v212_v15, 1e-24 }
  0xb5   :  { %310 = vrsqrt.f32 %v213_v16 }
  0xc2   :  { %v311_v17 = vpop.eup %310 }
  0xc3   :  { %v215_v18 = vmul.f32 20.0, %v311_v17 }
  0xc5   :  { %222 = vperm.xlu0 %309, %v215_v18  }
  0xdf   :  { %v117_v21 = vpop.f32.mrf.mxu0 }
  0xe0   :  { %v121_v22 = vadd.f32 %v117_v21, %v50_v19 }
  0xe1   :  { %v202_v23 = vpop.f32.mrf.mxu1  ;;  %v119_v24 = vpop.f32.mrf.mxu0 }
  0xe2   :  { %v206_v25 = vadd.f32 %v202_v23, %v133_v20  ;;  %123 = vst.msk [vmem:[#allocation2] sm:$0xff] %vm40_vm2, %v121_v22 }
  0xe3   :  { %v204_v26 = vpop.f32.mrf.mxu1 }
  0xe4   :  { %208 = vst.msk [vmem:[#allocation4] sm:$0x1] %vm44_vm1, %v206_v25 }
  0xe9   :  { %v219_v33 = vld [vmem:[#allocation2] sm:$0xff] }
  0xeb   :  { %v216_v27 = vld [vmem:[#allocation4] sm:$0x1] }
  0xec   :  { %v217_v28 = vmax.f32 %v216_v27, 1e-24 }
  0xee   :  { %312 = vrsqrt.f32 %v217_v28 }
  0xfb   :  { %v313_v32 = vpop.eup %312 }
  0xfc   :  { %v230_v34 = vrot.slane %v313_v32, %v229_v31 }
 0x140   :  { %v223_v35 = vpop.permute.xlu0 %222 }
 0x141   :  { %v225_v36 = vmul.f32 %v223_v35, %v219_v33 }
 0x143   :  { %v232_v37 = vmul.f32 %v230_v34, %v225_v36 }
 0x145   :  { %v242_v38 = vsel %vm40_vm2, %v232_v37, -inf  ;;  %v238_v45 = vsel %vm237_vm3, %v232_v37, 0.0  ;;  %v269_v47 = vsel %vm40_vm2, %v232_v37, 0.0 }
 0x146   :  { %243 = vmax.xlane.f32.xlu1 %v242_v38  ;;  %v239_v46 = vsel %vm40_vm2, %v238_v45, 0.0 }
 0x1cf   :  { %v244_v39 = vpop.xlane.xlu1 %243 }
 0x1d0   :  { %v245_v40 = vsub.f32 %v232_v37, %v244_v39 }
 0x1d2   :  { %v246_v41 = vmul.f32 1.442695, %v245_v40 }
 0x1d4   :  { %314 = vpow2.f32 %v246_v41 }
 0x1e1   :  { %v315_v43 = vpop.eup %314 }
 0x1e2   :  { %v248_v44 = vsel %vm40_vm2, %v315_v43, 0.0 }
 0x1e3   :  { %249 = vadd.xlane.f32.xlu1 %v248_v44 }
 0x1e7   :  { %240 = vadd.xlane.f32.xlu1 %v239_v46 }
 0x1eb   :  { %270 = vadd.xlane.f32.xlu1 %v269_v47 }
 0x26c   :  { %v250_v48 = vpop.xlane.xlu1 %249 }
 0x26d   :  { %316 = vlog2.f32 %v250_v48 }
 0x270   :  { %v241_v49 = vpop.xlane.xlu1 %240 }
 0x271   :  { %v262_v50 = vrot.slane %v241_v49, 4 }
 0x273   :  { %v263_v51 = vadd.f32 %v262_v50, %v241_v49 }
 0x274   :  { %v271_v52 = vpop.xlane.xlu1 %270 }
 0x275   :  { %v264_v53 = vrot.slane %v263_v51, 2  ;;  %v272_v54 = vrot.slane %v271_v52, 4 }
 0x277   :  { %v273_v55 = vadd.f32 %v272_v54, %v271_v52  ;;  %v265_v56 = vadd.f32 %v264_v53, %v263_v51 }
 0x279   :  { %v274_v57 = vrot.slane %v273_v55, 2  ;;  %v266_v62 = vrot.slane %v265_v56, 1 }
 0x27a   :  { %v317_v58 = vpop.eup %316 }
 0x27b   :  { %v252_v59 = vmul.f32 0.6931472, %v317_v58  ;;  %v275_v60 = vadd.f32 %v274_v57, %v273_v55  ;;  %v267_v3 = vadd.f32 %v266_v62, %v265_v56 }
 0x27d   :  { %v253_v61 = vadd.f32 %v252_v59, %v244_v39  ;;  %v276_v63 = vrot.slane %v275_v60, 1  ;;  %v268_v12 = vmul.f32 0.125, %v267_v3 }
 0x27f   :  { %v254_v0 = vsub.f32 %v253_v61, %v241_v49  ;;  %v277_v1 = vadd.f32 %v276_v63, %v275_v60 }
 0x281   :  { %v255_v2 = vrot.slane %v254_v0, 4  ;;  %v278_v5 = vsub.f32 %v277_v1, %v267_v3 }
 0x283   :  { %v256_v4 = vadd.f32 %v255_v2, %v254_v0  ;;  %v279_v8 = vmul.f32 0.017857144, %v278_v5 }
 0x285   :  { %v257_v6 = vrot.slane %v256_v4, 2  ;;  %v283_v11 = vsel %vm282_vm4, %v279_v8, 0.0 }
 0x286   :  { %v284_v14 = vsel %vm281_vm5, %v268_v12, %v283_v11 }
 0x287   :  { %v258_v7 = vadd.f32 %v257_v6, %v256_v4 }
 0x289   :  { %v259_v9 = vrot.slane %v258_v7, 1 }
 0x28b   :  { %v260_v10 = vadd.f32 %v259_v9, %v258_v7 }
 0x28d   :  { %v261_v13 = vmul.f32 0.125, %v260_v10 }
 0x28f   :  { %v285_v15 = vsel %vm280_vm6, %v261_v13, %v284_v14 }
 0x290   :  { %286 = vst [vmem:[#allocation10] sm:$0x1] %v285_v15 }
 0x291   :  { %369 = shalt.err (!%p366_p0)
}
 0x292   :  { %296 = dma.vmem_to_hbm [thread:$0]  %s294_s1, 16, %s426_s2, [#allocation7]  }
 0x293   :  { %382 = dma.done.wait [#allocation7], 16  }
 0x294   :  { %383 = vsyncadd [#allocation7], 4294967280 }
 0x295   :  { %300 = vsyncpa [#allocation6], 1 }
 0x296   :  { %301 = vsyncpa [#allocation9], 1 }
 0x297   :  { %302 = vsyncpa [#allocation7], 1 }

</bundles_post_ra>
